<compile_context>
chip_gen: v7x
topology: tpu7x:2x2x1
jax: 0.10.0
libtpu: 0.0.40
codegen_flags: <defaults>
</compile_context>

<pallas_src>
import functools

import jax
import jax.numpy as jnp
from jax.experimental import pallas as pl
from jax.experimental.pallas import tpu as pltpu


def gnn_kernel(h_ref, wcat_ref, bcat_ref, out_ref, *, step, hidden_size):
    """Runs all `step` GNN cell iterations for one row tile, fully in VMEM."""
    H = hidden_size
    h = h_ref[...].astype(jnp.float32)            # (tm, H)
    wcat = wcat_ref[...].astype(jnp.float32)      # (H, 6H) = [We^T @ Wih^T | Whh^T]
    # Hoist the bias broadcast out of the unrolled loop (JAX does not CSE it).
    bcat = jnp.broadcast_to(bcat_ref[...].astype(jnp.float32),
                            (h.shape[0], 6 * H))  # (tm, 6H)

    for _ in range(step):                         # step is static -> unrolled
        # Single MXU push per step: g = [gi | gh]
        g = jnp.dot(h, wcat, preferred_element_type=jnp.float32) + bcat
        gi = g[:, 0:3 * H]
        gh = g[:, 3 * H:6 * H]

        # One sigmoid on the packed [r|i] 2H-wide slab (single EUP pass).
        ri = jax.nn.sigmoid(gi[:, 0:2 * H] + gh[:, 0:2 * H])
        resetgate = ri[:, 0:H]
        inputgate = ri[:, H:2 * H]
        newgate = jnp.tanh(gi[:, 2 * H:3 * H] + resetgate * gh[:, 2 * H:3 * H])
        h = newgate + inputgate * (h - newgate)

    out_ref[...] = h.astype(out_ref.dtype)


def fuse_gnn_params(params):
    """One-time parameter preparation: fold linear_edge_in into w_ih and
    concatenate with w_hh into a single (H, 6H) weight + (1, 6H) bias."""
    H = params["edge_in_w"].shape[0]
    we_t = params["edge_in_w"].T                  # (H, H)
    be = params["edge_in_b"].reshape(1, H)        # (1, H)
    wih_t = params["w_ih"].T                      # (H, 3H)
    bih = params["b_ih"].reshape(1, 3 * H)        # (1, 3H)
    whh_t = params["w_hh"].T                      # (H, 3H)
    bhh = params["b_hh"].reshape(1, 3 * H)        # (1, 3H)

    wcomb = we_t @ wih_t                          # (H, 3H)
    bcomb = be @ wih_t + bih                      # (1, 3H)
    wcat = jnp.concatenate([wcomb, whh_t], axis=1)   # (H, 6H)
    bcat = jnp.concatenate([bcomb, bhh], axis=1)     # (1, 6H)
    return wcat, bcat


def gnn_forward(hidden, wcat, bcat, *, step, row_tile=512):
    """hidden: (B, L, H).  wcat/bcat: fused params from fuse_gnn_params."""
    B, L, H = hidden.shape
    M = B * L
    h2d = hidden.reshape(M, H)

    # Row tiling: whole slab for toy sizes, parallel row grid for large M
    # (2 TensorCores on v7x; keeps VMEM bounded on v7x's 64 MiB / v5e's
    # 16 MiB default scoped limit).
    tm = M if M <= row_tile else row_tile
    grid = (pl.cdiv(M, tm),)

    kernel = functools.partial(gnn_kernel, step=step, hidden_size=H)

    cost = pl.CostEstimate(
        flops=int(step * 2 * M * H * 6 * H),
        transcendentals=int(step * M * 3 * H),
        bytes_accessed=int(4 * (2 * M * H + H * 6 * H + 6 * H)),
    )

    out2d = pl.pallas_call(
        kernel,
        out_shape=jax.ShapeDtypeStruct((M, H), hidden.dtype),
        grid=grid,
        in_specs=[
            pl.BlockSpec((tm, H), lambda i: (i, 0)),        # hidden rows
            pl.BlockSpec((H, 6 * H), lambda i: (0, 0)),     # fused weight (resident)
            pl.BlockSpec((1, 6 * H), lambda i: (0, 0)),     # fused bias (resident)
        ],
        out_specs=pl.BlockSpec((tm, H), lambda i: (i, 0)),
        compiler_params=pltpu.CompilerParams(
            dimension_semantics=("parallel",)),
        cost_estimate=cost,
    )(h2d, wcat, bcat)

    return out2d.reshape(B, L, H)


def gnn_reference(hidden, params, *, step):
    """Pure-JAX reference matching the PyTorch semantics exactly (no fold)."""
    H = hidden.shape[-1]
    h = hidden
    for _ in range(step):
        inputs = h @ params["edge_in_w"].T + params["edge_in_b"]
        gi = inputs @ params["w_ih"].T + params["b_ih"]
        gh = h @ params["w_hh"].T + params["b_hh"]
        i_r, i_i, i_n = gi[..., :H], gi[..., H:2 * H], gi[..., 2 * H:]
        h_r, h_i, h_n = gh[..., :H], gh[..., H:2 * H], gh[..., 2 * H:]
        resetgate = jax.nn.sigmoid(i_r + h_r)
        inputgate = jax.nn.sigmoid(i_i + h_i)
        newgate = jnp.tanh(i_n + resetgate * h_n)
        h = newgate + inputgate * (h - newgate)
    return h


if __name__ == "__main__":
    # config: GNNStep=2, shop_mlp_layers[-1]=32  ->  hidden_size H=32, gate 3H=96
    STEP = 2
    B, L, H = 2, 8, 32

    key = jax.random.PRNGKey(0)
    ks = jax.random.split(key, 8)
    scale = 1.0 / jnp.sqrt(jnp.float32(H))

    params = {
        # PyTorch convention: Linear / F.linear weights are (out, in).
        "edge_in_w": jax.random.uniform(ks[0], (H, H), jnp.float32, -scale, scale),
        "edge_in_b": jax.random.uniform(ks[1], (H,), jnp.float32, -scale, scale),
        "w_ih": jax.random.uniform(ks[2], (3 * H, H), jnp.float32, -scale, scale),
        "b_ih": jax.random.uniform(ks[3], (3 * H,), jnp.float32, -scale, scale),
        "w_hh": jax.random.uniform(ks[4], (3 * H, H), jnp.float32, -scale, scale),
        "b_hh": jax.random.uniform(ks[5], (3 * H,), jnp.float32, -scale, scale),
    }

    hidden = jax.random.normal(ks[6], (B, L, H), jnp.float32)

    # One-time parameter fusion (cache these in a real pipeline).
    wcat, bcat = fuse_gnn_params(params)
    wcat = jax.block_until_ready(wcat)

    out = gnn_forward(hidden, wcat, bcat, step=STEP)
    out = jax.block_until_ready(out)

    ref = gnn_reference(hidden, params, step=STEP)
    assert out.shape == (B, L, H)
    # Fold reassociates f32 sums -> slightly relaxed tolerance vs bitwise.
    assert jnp.allclose(out, ref, atol=1e-4, rtol=1e-4), "mismatch vs reference"

    print("KERNEL_OK")
</pallas_src>

<mosaic_0001>
module attributes {stable_mosaic.version = 11 : i64} {
  func.func @gnn_kernel(%arg0: i32, %arg1: memref<16x32xf32, #tpu.memory_space<vmem>>, %arg2: memref<32x192xf32, #tpu.memory_space<vmem>>, %arg3: memref<1x192xf32, #tpu.memory_space<vmem>>, %arg4: memref<16x32xf32, #tpu.memory_space<vmem>>) attributes {dimension_semantics = [#tpu.dimension_semantics<parallel>], iteration_bounds = array<i64: 1>, scalar_prefetch = 0 : i64, scratch_operands = 0 : i64, tpu.core_type = #tpu.core_type<tc>, window_params = [{transform_indices = @transform_0, window_bounds = array<i64: 16, 32>}, {pipeline_mode = #tpu.pipeline_mode<synchronous>, transform_indices = @transform_1, window_bounds = array<i64: 32, 192>}, {pipeline_mode = #tpu.pipeline_mode<synchronous>, transform_indices = @transform_2, window_bounds = array<i64: 1, 192>}, {transform_indices = @transform_3, window_bounds = array<i64: 16, 32>}]} {
    %c0 = arith.constant 0 : index
    %c0_0 = arith.constant 0 : index
    %0 = vector.load %arg1[%c0, %c0_0] : memref<16x32xf32, #tpu.memory_space<vmem>>, vector<16x32xf32>
    %c0_1 = arith.constant 0 : index
    %c0_2 = arith.constant 0 : index
    %1 = vector.load %arg2[%c0_1, %c0_2] : memref<32x192xf32, #tpu.memory_space<vmem>>, vector<32x192xf32>
    %c0_3 = arith.constant 0 : index
    %c0_4 = arith.constant 0 : index
    %2 = vector.load %arg3[%c0_3, %c0_4] : memref<1x192xf32, #tpu.memory_space<vmem>>, vector<1x192xf32>
    %3 = vector.shape_cast %2 : vector<1x192xf32> to vector<1x192xf32>
    %4 = vector.broadcast %3 : vector<1x192xf32> to vector<16x192xf32>
    %cst = arith.constant dense<0.000000e+00> : vector<16x192xf32>
    %5 = tpu.matmul %0, %1, %cst {dimension_numbers = #tpu.dot_dimension_numbers<[1], [0], [0], [1], [0, 0, 1, 1], [], []>} : vector<16x32xf32>, vector<32x192xf32>, vector<16x192xf32> -> vector<16x192xf32>
    %6 = arith.addf %5, %4 : vector<16x192xf32>
    %7 = vector.extract_strided_slice %6 {offsets = [0, 0], sizes = [16, 96], strides = [1, 1]} : vector<16x192xf32> to vector<16x96xf32>
    %8 = vector.extract_strided_slice %6 {offsets = [0, 96], sizes = [16, 96], strides = [1, 1]} : vector<16x192xf32> to vector<16x96xf32>
    %9 = vector.extract_strided_slice %7 {offsets = [0, 0], sizes = [16, 64], strides = [1, 1]} : vector<16x96xf32> to vector<16x64xf32>
    %10 = vector.extract_strided_slice %8 {offsets = [0, 0], sizes = [16, 64], strides = [1, 1]} : vector<16x96xf32> to vector<16x64xf32>
    %11 = arith.addf %9, %10 : vector<16x64xf32>
    %12 = arith.negf %11 : vector<16x64xf32>
    %13 = math.exp %12 : vector<16x64xf32>
    %cst_5 = arith.constant 1.000000e+00 : f32
    %14 = vector.broadcast %cst_5 : f32 to vector<16x64xf32>
    %15 = arith.addf %14, %13 : vector<16x64xf32>
    %16 = arith.divf %14, %15 : vector<16x64xf32>
    %17 = vector.extract_strided_slice %16 {offsets = [0, 0], sizes = [16, 32], strides = [1, 1]} : vector<16x64xf32> to vector<16x32xf32>
    %18 = vector.extract_strided_slice %16 {offsets = [0, 32], sizes = [16, 32], strides = [1, 1]} : vector<16x64xf32> to vector<16x32xf32>
    %19 = vector.extract_strided_slice %7 {offsets = [0, 64], sizes = [16, 32], strides = [1, 1]} : vector<16x96xf32> to vector<16x32xf32>
    %20 = vector.extract_strided_slice %8 {offsets = [0, 64], sizes = [16, 32], strides = [1, 1]} : vector<16x96xf32> to vector<16x32xf32>
    %21 = arith.mulf %17, %20 : vector<16x32xf32>
    %22 = arith.addf %19, %21 : vector<16x32xf32>
    %23 = math.tanh %22 : vector<16x32xf32>
    %24 = arith.subf %0, %23 : vector<16x32xf32>
    %25 = arith.mulf %18, %24 : vector<16x32xf32>
    %26 = arith.addf %23, %25 : vector<16x32xf32>
    %cst_6 = arith.constant dense<0.000000e+00> : vector<16x192xf32>
    %27 = tpu.matmul %26, %1, %cst_6 {dimension_numbers = #tpu.dot_dimension_numbers<[1], [0], [0], [1], [0, 0, 1, 1], [], []>} : vector<16x32xf32>, vector<32x192xf32>, vector<16x192xf32> -> vector<16x192xf32>
    %28 = arith.addf %27, %4 : vector<16x192xf32>
    %29 = vector.extract_strided_slice %28 {offsets = [0, 0], sizes = [16, 96], strides = [1, 1]} : vector<16x192xf32> to vector<16x96xf32>
    %30 = vector.extract_strided_slice %28 {offsets = [0, 96], sizes = [16, 96], strides = [1, 1]} : vector<16x192xf32> to vector<16x96xf32>
    %31 = vector.extract_strided_slice %29 {offsets = [0, 0], sizes = [16, 64], strides = [1, 1]} : vector<16x96xf32> to vector<16x64xf32>
    %32 = vector.extract_strided_slice %30 {offsets = [0, 0], sizes = [16, 64], strides = [1, 1]} : vector<16x96xf32> to vector<16x64xf32>
    %33 = arith.addf %31, %32 : vector<16x64xf32>
    %34 = arith.negf %33 : vector<16x64xf32>
    %35 = math.exp %34 : vector<16x64xf32>
    %cst_7 = arith.constant 1.000000e+00 : f32
    %36 = vector.broadcast %cst_7 : f32 to vector<16x64xf32>
    %37 = arith.addf %36, %35 : vector<16x64xf32>
    %38 = arith.divf %36, %37 : vector<16x64xf32>
    %39 = vector.extract_strided_slice %38 {offsets = [0, 0], sizes = [16, 32], strides = [1, 1]} : vector<16x64xf32> to vector<16x32xf32>
    %40 = vector.extract_strided_slice %38 {offsets = [0, 32], sizes = [16, 32], strides = [1, 1]} : vector<16x64xf32> to vector<16x32xf32>
    %41 = vector.extract_strided_slice %29 {offsets = [0, 64], sizes = [16, 32], strides = [1, 1]} : vector<16x96xf32> to vector<16x32xf32>
    %42 = vector.extract_strided_slice %30 {offsets = [0, 64], sizes = [16, 32], strides = [1, 1]} : vector<16x96xf32> to vector<16x32xf32>
    %43 = arith.mulf %39, %42 : vector<16x32xf32>
    %44 = arith.addf %41, %43 : vector<16x32xf32>
    %45 = math.tanh %44 : vector<16x32xf32>
    %46 = arith.subf %26, %45 : vector<16x32xf32>
    %47 = arith.mulf %40, %46 : vector<16x32xf32>
    %48 = arith.addf %45, %47 : vector<16x32xf32>
    %c0_8 = arith.constant 0 : index
    %c0_9 = arith.constant 0 : index
    %49 = vector.load %arg4[%c0_8, %c0_9] : memref<16x32xf32, #tpu.memory_space<vmem>>, vector<16x32xf32>
    tpu.vector_store %arg4[%c0_8, %c0_9], %48 {strides = array<i32>} : memref<16x32xf32, #tpu.memory_space<vmem>>, vector<16x32xf32>,
    return
  }
  func.func @transform_0(%arg0: i32) -> (i32, i32) {
    %c0_i32 = arith.constant 0 : i32
    %c0_i32_0 = arith.constant 0 : i32
    return %arg0, %c0_i32 : i32, i32
  }
  func.func @transform_1(%arg0: i32) -> (i32, i32) {
    %c0_i32 = arith.constant 0 : i32
    %c0_i32_0 = arith.constant 0 : i32
    %c0_i32_1 = arith.constant 0 : i32
    return %c0_i32, %c0_i32_0 : i32, i32
  }
  func.func @transform_2(%arg0: i32) -> (i32, i32) {
    %c0_i32 = arith.constant 0 : i32
    %c0_i32_0 = arith.constant 0 : i32
    %c0_i32_1 = arith.constant 0 : i32
    return %c0_i32, %c0_i32_0 : i32, i32
  }
  func.func @transform_3(%arg0: i32) -> (i32, i32) {
    %c0_i32 = arith.constant 0 : i32
    %c0_i32_0 = arith.constant 0 : i32
    return %arg0, %c0_i32 : i32, i32
  }
}

</mosaic_0001>

<bundles_post_ra>
// kernel: tpu_custom_call.1
= control target key start
LH: loop header
LB: loop body
LE: loop exit
PB: predicated region body
PF: predicated region fallthrough
CT: control target
= control target key end

     0   :  { %8 = vsyncpa [#allocation3], 0  ;;  %s687_s0 = inlined_call_operand.hbm [shape: f32[16,32], index: 0, kind: input, shape index: {}]   ;;  %s688_s1 = inlined_call_operand.hbm [shape: f32[32,192], index: 1, kind: input, shape index: {}]   ;;  %s689_s2 = inlined_call_operand.vmem [shape: f32[1,192], index: 2, kind: input, shape index: {}]   ;;  %s690_s3 = inlined_call_operand.hbm [shape: f32[16,32], index: 3, kind: output, shape index: {}]  }
   0x1   :  { %9 = vsyncpa [#allocation6], 0 }
   0x2   :  { %10 = vsyncpa [#allocation4], 0  ;;  %s547_s12 = smov [#allocation2]   ;;  %s475_s16 = scalar_lea.hbm %s687_s0, 256 }
   0x3   :  { %s16_s13 = sshll.u32 %s547_s12, 4  ;;  %p476_p0 = scmp.ne.s32.totalorder %s687_s0, %s475_s16  ;;  %s17_s13 = int_to_ptr.vmem [resolvable:$true] %s16_s13 }
   0x4   :  { %p479_p1 = scmp.lt.u32.totalorder %s475_s16, %s687_s0 }
   0x6   :  { %p481_p2 = pnand %p479_p1, %p476_p0 }
   0x8   :  { %484 = shalt.err (!%p481_p2)
}
   0x9   :  { %s485_s21 = scalar_lea.vmem %s17_s13, 256  ;;  %p490_p4 = scmp.lt.s32.totalorder %s17_s13, %s17_s13 }
   0xa   :  { %p486_p3 = scmp.ne.s32.totalorder %s17_s13, %s485_s21  ;;  %p491_p5 = scmp.lt.s32.totalorder %s485_s21, %s485_s21 }
   0xc   :  { %p492_p6 = por %p491_p5, %p490_p4 }
   0xe   :  { %p493_p7 = pnand %p492_p6, %p486_p3 }
  0x10   :  { %496 = shalt.err (!%p493_p7)
}
  0x11   :  { %s548_s22 = smov 128   ;;  %s549_s23 = smov 8  }
  0x12   :  { %22 = dma.hbm_to_vmem [thread:$0]  %s687_s0, 256, %s17_s13, [#allocation3], %s548_s22, %s548_s22, %s549_s23  }
  0x13   :  { %s550_s26 = smov [#allocation5]   ;;  %s497_s30 = scalar_lea.hbm %s688_s1, 1024 }
  0x14   :  { %s28_s27 = sshll.u32 %s550_s26, 4  ;;  %p498_p8 = scmp.ne.s32.totalorder %s688_s1, %s497_s30  ;;  %s29_s27 = int_to_ptr.vmem [resolvable:$true] %s28_s27 }
  0x15   :  { %p501_p9 = scmp.lt.u32.totalorder %s497_s30, %s688_s1 }
  0x17   :  { %p503_p10 = pnand %p501_p9, %p498_p8 }
  0x19   :  { %506 = shalt.err (!%p503_p10)
}
  0x1a   :  { %s507_s8 = scalar_lea.vmem %s29_s27, 1024  ;;  %p512_p12 = scmp.lt.s32.totalorder %s29_s27, %s29_s27 }
  0x1b   :  { %p508_p11 = scmp.ne.s32.totalorder %s29_s27, %s507_s8  ;;  %p513_p13 = scmp.lt.s32.totalorder %s507_s8, %s507_s8 }
  0x1d   :  { %p514_p0 = por %p513_p13, %p512_p12 }
  0x1f   :  { %p515_p1 = pnand %p514_p0, %p508_p11 }
  0x21   :  { %518 = shalt.err (!%p515_p1)
}
  0x22   :  { %s551_s0 = smov 256   ;;  %s552_s9 = smov 16  }
  0x23   :  { %34 = dma.hbm_to_vmem [thread:$0]  %s688_s1, 1024, %s29_s27, [#allocation6], %s551_s0, %s551_s0, %s552_s9  }
  0x24   :  { %541 = dma.done.wait [#allocation3], 256  }
  0x25   :  { %542 = vsyncadd [#allocation3], 4294967040 }
  0x26   :  { %543 = dma.done.wait [#allocation6], 1024  }
  0x27   :  { %544 = vsyncadd [#allocation6], 4294966272  ;;  %v553_v0 = vmov 0.0   ;;  %v46_v1 = vld [vmem:[#allocation5 + $0x8] sm:$0xff]  ;;  %v48_v2 = vld [vmem:[#allocation5 + $0x18] sm:$0xff]  ;;  %vm65_vm0 = vcmask 261120   ;;  %v55_v15 = vlaneseq }
  0x28   :  { %136 = vmatprep.mubr.f32.mxu0 %v553_v0  ;;  %303 = vmatprep.mubr.f32.mxu1 %v553_v0  ;;  %v45_v3 = vld [vmem:[#allocation5] sm:$0xff]  ;;  %v424_v4 = vpack.c.bf16 %v48_v2, %v46_v1  ;;  %v47_v5 = vld [vmem:[#allocation5 + $0x10] sm:$0xff]  ;;  %v50_v6 = vld [vmem:[#allocation5 + $0x28] sm:$0xff]  ;;  %s554_s13 = smov 32   ;;  %s556_s14 = smov 64  }
  0x29   :  { %v52_v7 = vld [vmem:[#allocation5 + $0x38] sm:$0xff]  ;;  %v426_v8 = vpack.c.bf16 %v47_v5, %v45_v3  ;;  %v49_v10 = vld [vmem:[#allocation5 + $0x20] sm:$0xff]  ;;  %v51_v11 = vld [vmem:[#allocation5 + $0x30] sm:$0xff]  ;;  %v56_v16 = vshrl.u32 %v55_v15, 7  ;;  %s557_s15 = smov [#allocation7]  }
  0x2a   :  { %v428_v9 = vpack.c.bf16 %v52_v7, %v50_v6  ;;  %425 = vmatprep.subr.bf16.mxu0 %v424_v4  ;;  %433 = vmatprep.subr.bf16.mxu1 %v424_v4  ;;  %v430_v12 = vpack.c.bf16 %v51_v11, %v49_v10  ;;  %v607_v13 = vld [vmem:[#allocation2] sm:$0xff]  ;;  %v612_v14 = vld [vmem:[#allocation2 + $0x8] sm:$0xff]  ;;  %s403_s16 = sshll.u32 %s557_s15, 4  ;;  %s404_s16 = int_to_ptr.vmem [resolvable:$true] %s403_s16 }
  0x2b   :  { %427 = vmatpush1.bf16.msra.mxu0 %v426_v8  ;;  %435 = vmatpush1.bf16.msra.mxu1 %v426_v8  ;;  %v57_v17 = vsub.s32 0, %v56_v16  ;;  %v53_v18 = vld [vmem:[%s689_s2] sm:$0x3]  ;;  %v61_v20 = vsub.s32 1, %v56_v16  ;;  %s555_s2 = smov 96   ;;  %s519_s17 = scalar_lea.vmem %s404_s16, 256 }
  0x2c   :  { %429 = vmatprep.subr.bf16.mxu0 %v428_v9  ;;  %437 = vmatprep.subr.bf16.mxu1 %v428_v9  ;;  %p520_p2 = scmp.ne.s32.totalorder %s404_s16, %s519_s17  ;;  %p524_p3 = scmp.lt.s32.totalorder %s404_s16, %s404_s16 }
  0x2d   :  { %v619_v19 = vrot.slane %v53_v18, %v57_v17  ;;  %v622_v23 = vrot.slane %v53_v18, %v61_v20  ;;  %p525_p4 = scmp.lt.s32.totalorder %s519_s17, %s519_s17 }
  0x2f   :  { %431 = vmatpush1.bf16.msra.mxu0 %v430_v12  ;;  %439 = vmatpush1.bf16.msra.mxu1 %v430_v12  ;;  %p526_p5 = por %p525_p4, %p524_p3 }
  0x31   :  { %p527_p6 = pnand %p526_p5, %p520_p2 }
  0x32   :  { %416 = vmatmul.mubr.msk.f32.vlgmr.msra.gmra.mrb[0].mxu0 %vm65_vm0, %v607_v13 }
  0x33   :  { %142 = vmatprep.mubr.f32.mxu0 %v553_v0 }
  0x36   :  { %417 = vmatmul.mubr.msk.f32.gmra.mrb[2].mxu0 %vm65_vm0, %v612_v14 }
 0x105   :  { %v138_v21 = vpop.f32.mrb[0].mxu0 }
 0x106   :  { %v139_v22 = vadd.f32 %v138_v21, %v619_v19  ;;  %v140_v24 = vpop.f32.mrb[1].mxu0 }
 0x107   :  { %v141_v26 = vadd.f32 %v140_v24, %v622_v23 }
 0x108   :  { %153 = vrot.lane.b32.xlu0 %v139_v22, %s554_s13 }
 0x109   :  { %v144_v25 = vpop.f32.mrb[2].mxu0 }
 0x10a   :  { %v145_v27 = vadd.f32 %v144_v25, %v619_v19  ;;  %v146_v28 = vpop.f32.mrb[3].mxu0 }
 0x10b   :  { %v147_v29 = vadd.f32 %v146_v28, %v622_v23 }
 0x10c   :  { %157 = vrot.lane.b32.xlu1 %v145_v27, %s554_s13  ;;  %155 = vrot.lane.b32.xlu0 %v141_v26, %s554_s13 }
 0x110   :  { %159 = vrot.lane.b32.xlu1 %v147_v29, %s554_s13  ;;  %179 = vrot.lane.b32.xlu0 %v141_v26, %s555_s2 }
 0x114   :  { %181 = vrot.lane.b32.xlu1 %v147_v29, %s555_s2 }
 0x17a   :  { %v154_v30 = vpop.permute.xlu0 %153 }
 0x17e   :  { %v158_v31 = vpop.permute.xlu1 %157  ;;  %v156_v32 = vpop.permute.xlu0 %155 }
 0x17f   :  { %v161_v33 = vsel %vm65_vm0, %v154_v30, %v156_v32 }
 0x180   :  { %v165_v34 = vadd.f32 %v161_v33, %v139_v22 }
 0x182   :  { %v418_v35 = vmul.f32 -1.442695, %v165_v34  ;;  %v160_v36 = vpop.permute.xlu1 %159  ;;  %v180_v45 = vpop.permute.xlu0 %179 }
 0x183   :  { %v162_v37 = vsel %vm65_vm0, %v158_v31, %v160_v36 }
 0x184   :  { %451 = vpow2.f32 %v418_v35  ;;  %v166_v38 = vadd.f32 %v162_v37, %v145_v27 }
 0x186   :  { %v419_v39 = vmul.f32 -1.442695, %v166_v38  ;;  %v182_v48 = vpop.permute.xlu1 %181 }
 0x188   :  { %453 = vpow2.f32 %v419_v39 }
 0x18e   :  { %v452_v40 = vpop.eup %451 }
 0x18f   :  { %v173_v41 = vadd.f32 1.0, %v452_v40 }
 0x191   :  { %455 = vrcp.f32 %v173_v41 }
 0x192   :  { %v454_v42 = vpop.eup %453 }
 0x193   :  { %v174_v43 = vadd.f32 1.0, %v454_v42 }
 0x195   :  { %457 = vrcp.f32 %v174_v43 }
 0x19b   :  { %v456_v44 = vpop.eup %455 }
 0x19c   :  { %v185_v46 = vmul.f32 %v456_v44, %v180_v45 }
 0x19e   :  { %189 = vrot.lane.b32.xlu0 %v185_v46, %s556_s14 }
 0x19f   :  { %v458_v47 = vpop.eup %457 }
 0x1a0   :  { %v186_v49 = vmul.f32 %v458_v47, %v182_v48 }
 0x1a2   :  { %191 = vrot.lane.b32.xlu1 %v186_v49, %s556_s14 }
 0x210   :  { %v190_v50 = vpop.permute.xlu0 %189 }
 0x211   :  { %v195_v51 = vadd.f32 %v190_v50, %v139_v22 }
 0x213   :  { %459 = vtanh.f32 %v195_v51 }
 0x214   :  { %v192_v52 = vpop.permute.xlu1 %191 }
 0x215   :  { %v196_v53 = vadd.f32 %v192_v52, %v145_v27 }
 0x217   :  { %461 = vtanh.f32 %v196_v53 }
 0x21d   :  { %v460_v54 = vpop.eup %459 }
 0x21e   :  { %201 = vrot.lane.b32.xlu0 %v460_v54, %s556_s14 }
 0x221   :  { %v462_v55 = vpop.eup %461 }
 0x222   :  { %203 = vrot.lane.b32.xlu1 %v462_v55, %s556_s14 }
 0x290   :  { %v202_v56 = vpop.permute.xlu0 %201 }
 0x291   :  { %v207_v57 = vsub.f32 %v607_v13, %v202_v56 }
 0x293   :  { %211 = vrot.lane.b32.xlu0 %v207_v57, %s554_s13 }
 0x294   :  { %v204_v58 = vpop.permute.xlu1 %203 }
 0x295   :  { %v208_v59 = vsub.f32 %v612_v14, %v204_v58 }
 0x297   :  { %213 = vrot.lane.b32.xlu1 %v208_v59, %s554_s13 }
 0x305   :  { %v212_v60 = vpop.permute.xlu0 %211 }
 0x306   :  { %v217_v61 = vmul.f32 %v456_v44, %v212_v60 }
 0x308   :  { %221 = vrot.lane.b32.xlu0 %v217_v61, %s554_s13 }
 0x309   :  { %v214_v62 = vpop.permute.xlu1 %213 }
 0x30a   :  { %v218_v63 = vmul.f32 %v458_v47, %v214_v62 }
 0x30c   :  { %223 = vrot.lane.b32.xlu1 %v218_v63, %s554_s13 }
 0x37a   :  { %v222_v1 = vpop.permute.xlu0 %221 }
 0x37b   :  { %v227_v2 = vadd.f32 %v460_v54, %v222_v1 }
 0x37d   :  { %231 = vrot.lane.b32.xlu0 %v227_v2, %s556_s14 }
 0x37e   :  { %v224_v3 = vpop.permute.xlu1 %223 }
 0x37f   :  { %v228_v4 = vadd.f32 %v462_v55, %v224_v3 }
 0x381   :  { %233 = vrot.lane.b32.xlu1 %v228_v4, %s556_s14 }
 0x3ef   :  { %v232_v5 = vpop.permute.xlu0 %231 }
 0x3f0   :  { %420 = vmatmul.mubr.msk.f32.vlgmr.msra.gmra.mrb[0].mxu1 %vm65_vm0, %v232_v5 }
 0x3f1   :  { %309 = vmatprep.mubr.f32.mxu1 %v553_v0 }
 0x3f3   :  { %v234_v6 = vpop.permute.xlu1 %233 }
 0x3f4   :  { %421 = vmatmul.mubr.msk.f32.gmra.mrb[2].mxu1 %vm65_vm0, %v234_v6 }
 0x4c3   :  { %v305_v7 = vpop.f32.mrb[0].mxu1 }
 0x4c4   :  { %v306_v8 = vadd.f32 %v305_v7, %v619_v19  ;;  %v307_v9 = vpop.f32.mrb[1].mxu1 }
 0x4c5   :  { %v308_v10 = vadd.f32 %v307_v9, %v622_v23 }
 0x4c6   :  { %320 = vrot.lane.b32.xlu0 %v306_v8, %s554_s13 }
 0x4c7   :  { %v311_v11 = vpop.f32.mrb[2].mxu1  ;;  %322 = vrot.lane.b32.xlu1 %v308_v10, %s554_s13 }
 0x4c8   :  { %v312_v12 = vadd.f32 %v311_v11, %v619_v19  ;;  %v313_v13 = vpop.f32.mrb[3].mxu1 }
 0x4c9   :  { %v314_v14 = vadd.f32 %v313_v13, %v622_v23 }
 0x4ca   :  { %324 = vrot.lane.b32.xlu0 %v312_v12, %s554_s13 }
 0x4cb   :  { %326 = vrot.lane.b32.xlu1 %v314_v14, %s554_s13 }
 0x4ce   :  { %346 = vrot.lane.b32.xlu0 %v308_v10, %s555_s2 }
 0x4cf   :  { %348 = vrot.lane.b32.xlu1 %v314_v14, %s555_s2 }
 0x538   :  { %v321_v0 = vpop.permute.xlu0 %320 }
 0x539   :  { %v323_v15 = vpop.permute.xlu1 %322 }
 0x53a   :  { %v328_v16 = vsel %vm65_vm0, %v321_v0, %v323_v15 }
 0x53b   :  { %v332_v17 = vadd.f32 %v328_v16, %v306_v8 }
 0x53c   :  { %v325_v18 = vpop.permute.xlu0 %324 }
 0x53d   :  { %v422_v20 = vmul.f32 -1.442695, %v332_v17  ;;  %v327_v21 = vpop.permute.xlu1 %326 }
 0x53e   :  { %v329_v19 = vsel %vm65_vm0, %v325_v18, %v327_v21 }
 0x53f   :  { %463 = vpow2.f32 %v422_v20  ;;  %v333_v22 = vadd.f32 %v329_v19, %v312_v12 }
 0x540   :  { %v347_v29 = vpop.permute.xlu0 %346 }
 0x541   :  { %v423_v23 = vmul.f32 -1.442695, %v333_v22  ;;  %v349_v32 = vpop.permute.xlu1 %348 }
 0x543   :  { %465 = vpow2.f32 %v423_v23 }
 0x549   :  { %v464_v24 = vpop.eup %463 }
 0x54a   :  { %v340_v25 = vadd.f32 1.0, %v464_v24 }
 0x54c   :  { %467 = vrcp.f32 %v340_v25 }
 0x54d   :  { %v466_v26 = vpop.eup %465 }
 0x54e   :  { %v341_v27 = vadd.f32 1.0, %v466_v26 }
 0x550   :  { %469 = vrcp.f32 %v341_v27 }
 0x556   :  { %v468_v28 = vpop.eup %467 }
 0x557   :  { %v352_v30 = vmul.f32 %v468_v28, %v347_v29 }
 0x559   :  { %356 = vrot.lane.b32.xlu0 %v352_v30, %s556_s14 }
 0x55a   :  { %v470_v31 = vpop.eup %469 }
 0x55b   :  { %v353_v33 = vmul.f32 %v470_v31, %v349_v32 }
 0x55d   :  { %358 = vrot.lane.b32.xlu1 %v353_v33, %s556_s14 }
 0x5cb   :  { %v357_v34 = vpop.permute.xlu0 %356 }
 0x5cc   :  { %v362_v35 = vadd.f32 %v357_v34, %v306_v8 }
 0x5ce   :  { %471 = vtanh.f32 %v362_v35 }
 0x5cf   :  { %v359_v36 = vpop.permute.xlu1 %358 }
 0x5d0   :  { %v363_v37 = vadd.f32 %v359_v36, %v312_v12 }
 0x5d2   :  { %473 = vtanh.f32 %v363_v37 }
 0x5d8   :  { %v472_v38 = vpop.eup %471 }
 0x5d9   :  { %v366_v39 = vsub.f32 %v227_v2, %v472_v38 }
 0x5db   :  { %370 = vrot.lane.b32.xlu0 %v366_v39, %s555_s2 }
 0x5dc   :  { %v474_v40 = vpop.eup %473 }
 0x5dd   :  { %v367_v41 = vsub.f32 %v228_v4, %v474_v40 }
 0x5df   :  { %372 = vrot.lane.b32.xlu1 %v367_v41, %s555_s2 }
 0x64d   :  { %v371_v42 = vpop.permute.xlu0 %370 }
 0x64e   :  { %v376_v43 = vmul.f32 %v468_v28, %v371_v42 }
 0x650   :  { %380 = vrot.lane.b32.xlu0 %v376_v43, %s554_s13 }
 0x651   :  { %v373_v44 = vpop.permute.xlu1 %372 }
 0x652   :  { %v377_v45 = vmul.f32 %v470_v31, %v373_v44 }
 0x654   :  { %382 = vrot.lane.b32.xlu1 %v377_v45, %s554_s13 }
 0x6c2   :  { %v381_v46 = vpop.permute.xlu0 %380 }
 0x6c3   :  { %v386_v47 = vadd.f32 %v472_v38, %v381_v46 }
 0x6c5   :  { %390 = vrot.lane.b32.xlu0 %v386_v47, %s556_s14 }
 0x6c6   :  { %v383_v48 = vpop.permute.xlu1 %382 }
 0x6c7   :  { %v387_v49 = vadd.f32 %v474_v40, %v383_v48 }
 0x6c9   :  { %392 = vrot.lane.b32.xlu1 %v387_v49, %s556_s14 }
 0x737   :  { %v391_v50 = vpop.permute.xlu0 %390 }
 0x738   :  { %396 = vst.msk [vmem:[#allocation7] sm:$0xff] %vm65_vm0, %v391_v50 }
 0x73b   :  { %v393_v51 = vpop.permute.xlu1 %392 }
 0x73c   :  { %397 = vst.msk [vmem:[#allocation7 + $0x8] sm:$0xff] %vm65_vm0, %v393_v51 }
 0x73d   :  { %530 = shalt.err (!%p527_p6)
}
 0x73e   :  { %s531_s20 = scalar_lea.hbm %s690_s3, 256 }
 0x73f   :  { %p532_p7 = scmp.ne.s32.totalorder %s690_s3, %s531_s20  ;;  %p535_p8 = scmp.lt.u32.totalorder %s531_s20, %s690_s3 }
 0x741   :  { %p537_p9 = pnand %p535_p8, %p532_p7 }
 0x743   :  { %540 = shalt.err (!%p537_p9)
}
 0x744   :  { %409 = dma.vmem_to_hbm [thread:$0]  %s404_s16, 256, %s690_s3, [#allocation4], %s548_s22, %s548_s22, %s549_s23  }
 0x745   :  { %545 = dma.done.wait [#allocation4], 256  }
 0x746   :  { %546 = vsyncadd [#allocation4], 4294967040 }
 0x747   :  { %413 = vsyncpa [#allocation3], 1 }
 0x748   :  { %414 = vsyncpa [#allocation6], 1 }
 0x749   :  { %415 = vsyncpa [#allocation4], 1 }

</bundles_post_ra>
